<compile_context>
chip_gen: v7x
topology: tpu7x:2x2x1
jax: 0.10.0
libtpu: 0.0.40
codegen_flags: <defaults>
</compile_context>

<pallas_src>
import functools
import math

import jax
import jax.numpy as jnp
from jax.experimental import pallas as pl
from jax.experimental.pallas import tpu as pltpu


def _cdiv(a, b):
    return -(-a // b)


def _round_up(x, m):
    return ((x + m - 1) // m) * m


# ---------------------------------------------------------------------------
# Pallas projection kernel: folded (tm, g*K) @ (g*K, g*N), f32 accumulation,
# f32 bias add, bf16 store.
# ---------------------------------------------------------------------------
def _proj_kernel(p_ref, w_ref, b_ref, o_ref):
    # p_ref: (tm, gK) bf16; w_ref: (gK, gN) bf16; b_ref: (1, gN) f32;
    # o_ref: (tm, gN) out_dtype (bf16 by default).
    acc = jnp.dot(p_ref[...], w_ref[...], preferred_element_type=jnp.float32)
    o_ref[...] = (acc + b_ref[...]).astype(o_ref.dtype)


_VMEM_BUDGET_BYTES = 12 * 1024 * 1024   # under v5e's 16 MiB scoped-VMEM default
_ROW_TILE_CAP = 4096                    # folded rows per grid step (upper bound)
_MIN_PARALLEL_ROWS = 16                 # force >= 2 grid steps above this (v7x)


def _choose_row_tiling(M2, gK, gN, itemsize):
    """Pick (tm, nsteps) from a VMEM budget; padding stays below one tile row-group."""
    weight_bytes = gK * gN * itemsize * 2               # weight, x2 buffers (conservative)
    per_row = 2 * itemsize * (gK + gN)                   # double-buffered in + out rows
    tm_cap = max(8, (_VMEM_BUDGET_BYTES - weight_bytes) // per_row)
    tm_cap = min(tm_cap, _ROW_TILE_CAP)
    min_steps = 2 if M2 >= _MIN_PARALLEL_ROWS else 1      # megacore gets >= 2 steps
    nsteps = max(min_steps, _cdiv(M2, tm_cap))
    tm = _round_up(_cdiv(M2, nsteps), 8)
    return tm, nsteps


def _proj_matmul(p2, w_big, b_big, *, tm, out_dtype, true_flops):
    """p2: (M2_pad, gK) bf16, w_big: (gK, gN) bf16, b_big: (1, gN) f32 -> (M2_pad, gN)."""
    M2_pad, Kb = p2.shape
    Nb = w_big.shape[1]
    assert M2_pad % tm == 0, (M2_pad, tm)
    grid = (M2_pad // tm,)
    bytes_accessed = (M2_pad * Kb * p2.dtype.itemsize
                      + Kb * Nb * w_big.dtype.itemsize
                      + Nb * 4
                      + M2_pad * Nb * jnp.dtype(out_dtype).itemsize)
    return pl.pallas_call(
        _proj_kernel,
        out_shape=jax.ShapeDtypeStruct((M2_pad, Nb), out_dtype),
        grid_spec=pltpu.PrefetchScalarGridSpec(
            num_scalar_prefetch=0,
            grid=grid,
            in_specs=[
                pl.BlockSpec((tm, Kb), lambda i: (i, 0)),
                # Constant index maps: the pipeline DMAs weight/bias once and
                # keeps them resident across the row grid.
                pl.BlockSpec((Kb, Nb), lambda i: (0, 0)),
                pl.BlockSpec((1, Nb), lambda i: (0, 0)),
            ],
            out_specs=pl.BlockSpec((tm, Nb), lambda i: (i, 0)),
        ),
        compiler_params=pltpu.CompilerParams(
            dimension_semantics=("parallel",),
            vmem_limit_bytes=32 * 1024 * 1024),
        cost_estimate=pl.CostEstimate(
            flops=true_flops, transcendentals=0, bytes_accessed=bytes_accessed),
    )(p2, w_big, b_big)


# ---------------------------------------------------------------------------
# Forward implementations (jitted via functools.partial in __init__).
# ---------------------------------------------------------------------------
def _extract_patches(x, *, patch_size, compute_dtype):
    """(B, C, H, W) -> (M, K) patch matrix; fuses into one XLA pass under jit."""
    B, C, H, W = x.shape
    p = patch_size
    Hp, Wp = H // p, W // p
    M = B * Hp * Wp
    K = C * p * p
    xp = x.reshape(B, C, Hp, p, Wp, p)
    xp = jnp.transpose(xp, (0, 2, 4, 1, 3, 5))            # (B, Hp, Wp, C, p, p)
    patches = xp.reshape(M, K).astype(compute_dtype)       # (M, K), flatten = (C, ph, pw)
    return patches, M, K, Hp, Wp


def _forward_pallas(x, w_big, b_big, *, patch_size, embed_dim, fold,
                    compute_dtype, out_dtype):
    B, C, H, W = x.shape
    N = embed_dim
    g = fold

    patches, M, K, Hp, Wp = _extract_patches(
        x, patch_size=patch_size, compute_dtype=compute_dtype)

    # Fold g consecutive patches per kernel row (free row-major reshape) so the
    # output tile is g*N lanes (a multiple of 128 when possible).
    M2 = _cdiv(M, g)
    tm, nsteps = _choose_row_tiling(M2, g * K, g * N,
                                    jnp.dtype(compute_dtype).itemsize)
    M2_pad = tm * nsteps
    M_pad = M2_pad * g
    if M_pad > M:
        # Small pad (< one tile of rows); fuses with the extraction pass.
        patches = jnp.pad(patches, ((0, M_pad - M), (0, 0)))
    folded = patches.reshape(M2_pad, g * K)

    out2 = _proj_matmul(folded, w_big, b_big, tm=tm, out_dtype=out_dtype,
                        true_flops=2 * M * K * N)
    out = out2.reshape(M_pad, N)[:M]                        # unfold + drop pad rows
    return out.reshape(B, Hp * Wp, N)


def _forward_xla(x, w2d_c, bias, *, patch_size, embed_dim, compute_dtype,
                 out_dtype):
    """Small-problem fast path: fused XLA extraction + einsum (no Pallas launch)."""
    B, C, H, W = x.shape
    patches, M, K, Hp, Wp = _extract_patches(
        x, patch_size=patch_size, compute_dtype=compute_dtype)
    out = jnp.dot(patches, w2d_c, preferred_element_type=jnp.float32)
    out = (out + bias[None, :]).astype(out_dtype)
    return out.reshape(B, Hp * Wp, embed_dim)


# ---------------------------------------------------------------------------
# Module wrapper.
# ---------------------------------------------------------------------------
class PatchEmbedPallas:
    """Image to Patch Embedding (Conv2d k=s=patch_size -> flatten -> transpose).

    Note: the projection runs in bf16 on the MXU with f32 accumulation, and the
    output is emitted in `out_dtype` (bf16 by default, per the perf review) —
    pass out_dtype=jnp.float32 if exact f32 output parity is required downstream.
    """

    def __init__(self, img_size=16, patch_size=4, in_chans=4, embed_dim=32,
                 norm_layer=None, compute_dtype=jnp.bfloat16,
                 out_dtype=jnp.bfloat16, key=None):
        self.img_size = (img_size, img_size)
        self.patch_size = (patch_size, patch_size)
        self.patches_resolution = [img_size // patch_size, img_size // patch_size]
        self.num_patches = self.patches_resolution[0] * self.patches_resolution[1]
        self.in_chans = in_chans
        self.embed_dim = embed_dim
        self.compute_dtype = compute_dtype
        self.out_dtype = out_dtype

        if norm_layer is not None:
            # TODO(synk): LayerNorm(embed_dim) epilogue; reference default is None.
            raise NotImplementedError("norm_layer is not supported in this kernel")
        self.norm = None

        if key is None:
            key = jax.random.PRNGKey(0)
        kw, kb = jax.random.split(key)
        # Conv2d weight: (embed_dim, in_chans, p, p); bias: (embed_dim,)
        self.conv_w = 0.02 * jax.random.normal(
            kw, (embed_dim, in_chans, patch_size, patch_size), jnp.float32)
        self.conv_b = 0.02 * jax.random.normal(kb, (embed_dim,), jnp.float32)

        # Fold factor: pack g consecutive patches per kernel row so the output
        # tile is g*embed_dim lanes (multiple of 128 when possible).
        g = 128 // math.gcd(128, embed_dim)
        if g > 8:   # odd embed_dim: cap block-diagonal weight blow-up
            g = 8
        self.fold = g

        # Hoisted weight/bias prep (done once): pre-transposed (K, N) weight,
        # expanded to a block-diagonal (g*K, g*N) bf16 matrix + tiled f32 bias.
        K = in_chans * patch_size * patch_size
        w2d = self.conv_w.reshape(embed_dim, K).T                     # (K, N)
        eye = jnp.eye(g, dtype=w2d.dtype)
        w_big = jnp.einsum("gh,kn->gkhn", eye, w2d).reshape(g * K, g * embed_dim)
        self.w_big = w_big.astype(compute_dtype)
        self.b_big = jnp.tile(self.conv_b.reshape(1, -1), (1, g)).astype(jnp.float32)
        # Plain (K, N) weight for the XLA fast path (same compute dtype).
        self.w2d_c = w2d.astype(compute_dtype)
        self.bias_f32 = self.conv_b.astype(jnp.float32)

        # Below this many folded rows, the pallas_call launch + separate
        # extraction pass cost more than one fused XLA einsum.
        self.min_pallas_rows = 512

        self._pallas = jax.jit(functools.partial(
            _forward_pallas, patch_size=patch_size, embed_dim=embed_dim,
            fold=g, compute_dtype=compute_dtype, out_dtype=out_dtype))
        self._xla = jax.jit(functools.partial(
            _forward_xla, patch_size=patch_size, embed_dim=embed_dim,
            compute_dtype=compute_dtype, out_dtype=out_dtype))

    def __call__(self, x, *, force_pallas=False):
        B, C, H, W = x.shape
        assert H == self.img_size[0] and W == self.img_size[1], (
            f"Input image size ({H}*{W}) doesn't match model "
            f"({self.img_size[0]}*{self.img_size[1]}).")
        M2 = _cdiv(B * self.num_patches, self.fold)
        if force_pallas or M2 >= self.min_pallas_rows:
            return self._pallas(x, self.w_big, self.b_big)
        return self._xla(x, self.w2d_c, self.bias_f32)


def _reference(x, conv_w, conv_b, patch_size, compute_dtype=None):
    """Pure-JAX reference: strided conv == per-patch linear projection (f32 out)."""
    B, C, H, W = x.shape
    p = patch_size
    Hp, Wp = H // p, W // p
    xp = x.reshape(B, C, Hp, p, Wp, p)
    xp = jnp.transpose(xp, (0, 2, 4, 1, 3, 5)).reshape(B, Hp * Wp, C * p * p)
    w = conv_w.reshape(conv_w.shape[0], -1)                  # (N, K)
    if compute_dtype is not None:
        xp = xp.astype(compute_dtype)
        w = w.astype(compute_dtype)
    out = jnp.einsum("bmk,nk->bmn", xp, w, preferred_element_type=jnp.float32)
    return out + conv_b[None, None, :]


if __name__ == "__main__":
    key = jax.random.PRNGKey(0)
    kx, kx2, kparams = jax.random.split(key, 3)

    # --- Small demo shape (matches the module defaults used here) -----------
    B, C, H, W = 2, 4, 16, 16
    patch_size, embed_dim = 4, 32
    x = jax.random.normal(kx, (B, C, H, W), jnp.float32)

    mod = PatchEmbedPallas(img_size=H, patch_size=patch_size, in_chans=C,
                           embed_dim=embed_dim, key=kparams)

    # Exercise the Pallas kernel explicitly (default dispatch would route this
    # tiny problem to the XLA fast path).
    out = jax.block_until_ready(mod(x, force_pallas=True))
    assert out.shape == (B, (H // patch_size) * (W // patch_size), embed_dim)

    out_f32 = out.astype(jnp.float32)
    # Matching-precision reference (bf16 operands, f32 accumulation).
    ref_bf16 = _reference(x, mod.conv_w, mod.conv_b, patch_size,
                          compute_dtype=mod.compute_dtype)
    assert jnp.allclose(out_f32, ref_bf16, atol=3e-2, rtol=3e-2), (
        float(jnp.max(jnp.abs(out_f32 - ref_bf16))))
    # Coarser check vs the pure-f32 reference (bf16 rounding tolerance).
    ref_f32 = _reference(x, mod.conv_w, mod.conv_b, patch_size)
    assert jnp.allclose(out_f32, ref_f32, atol=7e-2, rtol=7e-2), (
        float(jnp.max(jnp.abs(out_f32 - ref_f32))))

    # Default dispatch at this size takes the XLA fast path; it must agree.
    out_fast = jax.block_until_ready(mod(x))
    assert out_fast.shape == out.shape
    assert jnp.allclose(out_f32, out_fast.astype(jnp.float32), atol=3e-2, rtol=3e-2)

    # --- Slightly larger shape: multi-step parallel grid + megacore split ---
    B2, H2 = 2, 64
    x2 = jax.random.normal(kx2, (B2, C, H2, H2), jnp.float32)
    mod2 = PatchEmbedPallas(img_size=H2, patch_size=patch_size, in_chans=C,
                            embed_dim=embed_dim, key=kparams)
    out2 = jax.block_until_ready(mod2(x2, force_pallas=True))
    assert out2.shape == (B2, (H2 // patch_size) ** 2, embed_dim)
    ref2 = _reference(x2, mod2.conv_w, mod2.conv_b, patch_size)
    assert jnp.allclose(out2.astype(jnp.float32), ref2, atol=7e-2, rtol=7e-2), (
        float(jnp.max(jnp.abs(out2.astype(jnp.float32) - ref2))))

    print("KERNEL_OK")
</pallas_src>

<mosaic_0001>
module attributes {stable_mosaic.version = 11 : i64} {
  func.func @_proj_kernel(%arg0: i32, %arg1: memref<8x256xbf16, #tpu.memory_space<vmem>>, %arg2: memref<256x128xbf16, #tpu.memory_space<vmem>>, %arg3: memref<1x128xf32, #tpu.memory_space<vmem>>, %arg4: memref<8x128xbf16, #tpu.memory_space<vmem>>) attributes {dimension_semantics = [#tpu.dimension_semantics<parallel>], iteration_bounds = array<i64: 1>, scalar_prefetch = 0 : i64, scratch_operands = 0 : i64, tpu.core_type = #tpu.core_type<tc>, window_params = [{transform_indices = @transform_0, window_bounds = array<i64: 8, 256>}, {pipeline_mode = #tpu.pipeline_mode<synchronous>, transform_indices = @transform_1, window_bounds = array<i64: 256, 128>}, {pipeline_mode = #tpu.pipeline_mode<synchronous>, transform_indices = @transform_2, window_bounds = array<i64: 1, 128>}, {transform_indices = @transform_3, window_bounds = array<i64: 8, 128>}]} {
    %c0 = arith.constant 0 : index
    %c0_0 = arith.constant 0 : index
    %0 = vector.load %arg1[%c0, %c0_0] : memref<8x256xbf16, #tpu.memory_space<vmem>>, vector<8x256xbf16>
    %c0_1 = arith.constant 0 : index
    %c0_2 = arith.constant 0 : index
    %1 = vector.load %arg2[%c0_1, %c0_2] : memref<256x128xbf16, #tpu.memory_space<vmem>>, vector<256x128xbf16>
    %cst = arith.constant dense<0.000000e+00> : vector<8x128xf32>
    %2 = tpu.matmul %0, %1, %cst {dimension_numbers = #tpu.dot_dimension_numbers<[1], [0], [0], [1], [0, 0, 1, 1], [], []>} : vector<8x256xbf16>, vector<256x128xbf16>, vector<8x128xf32> -> vector<8x128xf32>
    %c0_3 = arith.constant 0 : index
    %c0_4 = arith.constant 0 : index
    %3 = vector.load %arg3[%c0_3, %c0_4] : memref<1x128xf32, #tpu.memory_space<vmem>>, vector<1x128xf32>
    %4 = vector.broadcast %3 : vector<1x128xf32> to vector<8x128xf32>
    %5 = arith.addf %2, %4 : vector<8x128xf32>
    %6 = arith.truncf %5 : vector<8x128xf32> to vector<8x128xbf16>
    %c0_5 = arith.constant 0 : index
    %c0_6 = arith.constant 0 : index
    %7 = vector.load %arg4[%c0_5, %c0_6] : memref<8x128xbf16, #tpu.memory_space<vmem>>, vector<8x128xbf16>
    tpu.vector_store %arg4[%c0_5, %c0_6], %6 {strides = array<i32>} : memref<8x128xbf16, #tpu.memory_space<vmem>>, vector<8x128xbf16>,
    return
  }
  func.func @transform_0(%arg0: i32) -> (i32, i32) {
    %c0_i32 = arith.constant 0 : i32
    %c0_i32_0 = arith.constant 0 : i32
    return %arg0, %c0_i32 : i32, i32
  }
  func.func @transform_1(%arg0: i32) -> (i32, i32) {
    %c0_i32 = arith.constant 0 : i32
    %c0_i32_0 = arith.constant 0 : i32
    %c0_i32_1 = arith.constant 0 : i32
    return %c0_i32, %c0_i32_0 : i32, i32
  }
  func.func @transform_2(%arg0: i32) -> (i32, i32) {
    %c0_i32 = arith.constant 0 : i32
    %c0_i32_0 = arith.constant 0 : i32
    %c0_i32_1 = arith.constant 0 : i32
    return %c0_i32, %c0_i32_0 : i32, i32
  }
  func.func @transform_3(%arg0: i32) -> (i32, i32) {
    %c0_i32 = arith.constant 0 : i32
    %c0_i32_0 = arith.constant 0 : i32
    return %arg0, %c0_i32 : i32, i32
  }
}

</mosaic_0001>

<bundles_post_ra>
// kernel: _forward_pallas.1
= control target key start
LH: loop header
LB: loop body
LE: loop exit
PB: predicated region body
PF: predicated region fallthrough
CT: control target
= control target key end

     0   :  { %s340_s1 = inlined_call_operand.vmem [shape: bf16[256,128], index: 1, kind: input, shape index: {}]   ;;  %s341_s0 = inlined_call_operand.vmem [shape: bf16[8,256], index: 0, kind: input, shape index: {}]   ;;  %s342_s2 = inlined_call_operand.vmem [shape: f32[1,128], index: 2, kind: input, shape index: {}]   ;;  %s343_s3 = inlined_call_operand.vmem [shape: bf16[8,128], index: 3, kind: output, shape index: {}]  }
   0x1   :  { %v245_v0 = vld [vmem:[%s340_s1 + $0x40] sm:$0xff]   ;;  %v247_v2 = vld [vmem:[%s340_s1 + $0x48] sm:$0xff]   ;;  %v249_v4 = vld [vmem:[%s340_s1 + $0x50] sm:$0xff]  }
   0x2   :  { %v246_v1 = vld [vmem:[%s340_s1] sm:$0xff]   ;;  %223 = vmatprep.subr.bf16.mxu0 %v245_v0  ;;  %v248_v3 = vld [vmem:[%s340_s1 + $0x8] sm:$0xff]   ;;  %v250_v5 = vld [vmem:[%s340_s1 + $0x10] sm:$0xff]  }
   0x3   :  { %224 = vmatpush3.bf16.msra.mxu0 %v246_v1  ;;  %v251_v6 = vld [vmem:[%s340_s1 + $0x58] sm:$0xff]   ;;  %v253_v8 = vld [vmem:[%s340_s1 + $0x60] sm:$0xff]   ;;  %v255_v10 = vld [vmem:[%s340_s1 + $0x68] sm:$0xff]  }
   0x4   :  { %225 = vmatprep.subr.bf16.mxu0 %v247_v2  ;;  %v252_v7 = vld [vmem:[%s340_s1 + $0x18] sm:$0xff]   ;;  %v254_v9 = vld [vmem:[%s340_s1 + $0x20] sm:$0xff]   ;;  %v256_v13 = vld [vmem:[%s340_s1 + $0x28] sm:$0xff]  }
   0x5   :  { %v15_v11 = vld [vmem:[%s341_s0] sm:$0xff]  ;;  %v257_v14 = vld [vmem:[%s340_s1 + $0x70] sm:$0xff]   ;;  %v259_v16 = vld [vmem:[%s340_s1 + $0x78] sm:$0xff]  }
   0x6   :  { %v206_v12 = vcombine.high %v15_v11, %v15_v11  ;;  %v258_v15 = vld [vmem:[%s340_s1 + $0x30] sm:$0xff]   ;;  %v260_v17 = vld [vmem:[%s340_s1 + $0x38] sm:$0xff]   ;;  %v205_v18 = vcombine.low %v15_v11, %v15_v11  ;;  %v204_v20 = vld [vmem:[%s342_s2] ss:$0 sm:$0xff] }
   0x7   :  { %226 = vmatpush3.bf16.msra.mxu0 %v248_v3 }
   0x8   :  { %227 = vmatprep.subr.bf16.mxu0 %v249_v4  ;;  %190 = vmatprep.mubr.bf16.mxu0 %v206_v12 }
   0xb   :  { %228 = vmatpush3.bf16.msra.mxu0 %v250_v5 }
   0xc   :  { %229 = vmatprep.subr.bf16.mxu0 %v251_v6 }
   0xf   :  { %230 = vmatpush3.bf16.msra.mxu0 %v252_v7 }
  0x10   :  { %231 = vmatprep.subr.bf16.mxu0 %v253_v8 }
  0x13   :  { %232 = vmatpush3.bf16.msra.mxu0 %v254_v9 }
  0x14   :  { %233 = vmatprep.subr.bf16.mxu0 %v255_v10 }
  0x17   :  { %234 = vmatpush3.bf16.msra.mxu0 %v256_v13 }
  0x18   :  { %235 = vmatprep.subr.bf16.mxu0 %v257_v14 }
  0x1b   :  { %236 = vmatpush3.bf16.msra.mxu0 %v258_v15 }
  0x1c   :  { %237 = vmatprep.subr.bf16.mxu0 %v259_v16 }
  0x1f   :  { %238 = vmatpush3.bf16.msra.mxu0 %v260_v17 }
  0x22   :  { %191 = vmatmul.mubr.bf16.vlgmr.msra.gmra.mrb[0].mxu0 %v205_v18 }
  0xf5   :  { %v239_v19 = vpop.f32.mrb[0].mxu0 }
  0xf6   :  { %v240_v21 = vpop.f32.mrb[1].mxu0 }
  0xf7   :  { %v241_v22 = vadd.f32 %v240_v21, %v239_v19  ;;  %v242_v23 = vpop.f32.mrb[2].mxu0 }
  0xf8   :  { %v243_v24 = vpop.f32.mrb[3].mxu0 }
  0xf9   :  { %v193_v25 = vadd.f32 %v241_v22, %v204_v20 }
  0xfb   :  { %v198_v26 = vpack.c.bf16 %v193_v25, %v193_v25 }
  0xfd   :  { %199 = vst [vmem:[%s343_s3] sm:$0xf] %v198_v26 }

</bundles_post_ra>
